<compile_context>
chip_gen: v5e
topology: v5e:2x2
jax: 0.10.0
libtpu: 0.0.40
codegen_flags: <defaults>
</compile_context>

<pallas_src>
import jax
import jax.numpy as jnp
from jax.experimental import pallas as pl
from jax.experimental.pallas import tpu as pltpu


def _round_up(x, m):
    return ((x + m - 1) // m) * m


def _sublane_align(dtype):
    # Sub-32-bit dtypes pack along sublanes: min second-minor tile is 8/16/32.
    itemsize = jnp.dtype(dtype).itemsize
    return {4: 8, 2: 16, 1: 32}.get(itemsize, 8)


def _pick_tile(padded, target, align):
    """Largest multiple of `align` that divides `padded` and is <= target."""
    best = align
    t = align
    limit = min(target, padded)
    while t <= limit:
        if padded % t == 0:
            best = t
        t += align
    return best


def _linear_kernel(x_ref, w_ref, b_ref, o_ref, acc_ref):
    # x_ref: (tm, tk)  w_ref: (tk, tn)  b_ref: (1, tn)  o_ref: (tm, tn)
    k = pl.program_id(2)

    @pl.when(k == 0)
    def _():
        acc_ref[...] = jnp.zeros_like(acc_ref)

    acc_ref[...] += jnp.dot(
        x_ref[...], w_ref[...], preferred_element_type=jnp.float32
    )

    @pl.when(k == pl.num_programs(2) - 1)
    def _():
        o_ref[...] = (
            acc_ref[...] + b_ref[...].astype(jnp.float32)
        ).astype(o_ref.dtype)


def pallas_linear(x, weight_t, bias, *, tm=512, tn=1024, tk=1024):
    """x: [..., K], weight_t: [K, N] (transposed PyTorch weight), bias: [N] -> [..., N]"""
    *lead, K = x.shape
    Kw, N = weight_t.shape
    assert K == Kw, f"in_features mismatch: {K} vs {Kw}"
    x2d = x.reshape(-1, K)
    M = x2d.shape[0]

    # Pad only to layout alignment (dtype-aware sublanes for M, 128 lanes for K/N).
    sub = _sublane_align(x.dtype)
    Mp = _round_up(M, sub)
    Kp = _round_up(K, 128)
    Np = _round_up(N, 128)

    # Tiles: largest aligned divisor of the padded size <= the requested target,
    # so the grid divides exactly without padding up to tile multiples.
    tm = _pick_tile(Mp, tm, sub)
    tn = _pick_tile(Np, tn, 128)
    tk = _pick_tile(Kp, tk, 128)

    # v7x megacore: make sure both TensorCores get at least one parallel block.
    if (Mp // tm) * (Np // tn) < 2:
        if Mp // sub >= 2:
            tm = _pick_tile(Mp, Mp // 2, sub)
        elif Np // 128 >= 2:
            tn = _pick_tile(Np, Np // 2, 128)

    # Materialize padded copies ONLY when the shapes are not already aligned.
    if (Mp != M) or (Kp != K):
        x_p = jnp.zeros((Mp, Kp), x2d.dtype).at[:M, :K].set(x2d)
    else:
        x_p = x2d
    if (Kp != K) or (Np != N):
        w_p = jnp.zeros((Kp, Np), weight_t.dtype).at[:K, :N].set(weight_t)
    else:
        w_p = weight_t
    if Np != N:
        b_p = jnp.zeros((1, Np), bias.dtype).at[0, :N].set(bias)
    else:
        b_p = bias.reshape(1, N)

    grid = (Mp // tm, Np // tn, Kp // tk)

    itemsize = jnp.dtype(x.dtype).itemsize
    cost = pl.CostEstimate(
        flops=2 * Mp * Np * Kp,
        transcendentals=0,
        bytes_accessed=(
            Mp * Kp * (Np // tn)      # x is re-streamed once per output column stripe
            + Kp * Np * (Mp // tm)    # W is re-streamed once per output row stripe
            + Mp * Np                 # output written once
        ) * itemsize,
    )

    out_p = pl.pallas_call(
        _linear_kernel,
        out_shape=jax.ShapeDtypeStruct((Mp, Np), x.dtype),
        grid_spec=pltpu.PrefetchScalarGridSpec(
            num_scalar_prefetch=0,
            grid=grid,
            in_specs=[
                pl.BlockSpec((tm, tk), lambda i, j, k: (i, k)),
                pl.BlockSpec((tk, tn), lambda i, j, k: (k, j)),
                pl.BlockSpec((1, tn), lambda i, j, k: (0, j)),
            ],
            out_specs=pl.BlockSpec((tm, tn), lambda i, j, k: (i, j)),
            scratch_shapes=[pltpu.VMEM((tm, tn), jnp.float32)],
        ),
        compiler_params=pltpu.CompilerParams(
            dimension_semantics=("parallel", "parallel", "arbitrary"),
            # Above v5e's 16 MiB scoped default, comfortably under v7x's 64 MiB
            # physical VMEM; default tiles use ~18 MiB double-buffered.
            vmem_limit_bytes=48 * 1024 * 1024,
        ),
        cost_estimate=cost,
    )(x_p, w_p, b_p)

    out2d = out_p[:M, :N] if (Mp != M or Np != N) else out_p
    return out2d.reshape(*lead, N)


def init_linear_params(key, in_features, out_features, dtype=jnp.float32):
    """Deterministic init matching the PyTorch module:
       weight: xavier_uniform_, bias: default nn.Linear uniform(-1/sqrt(in), 1/sqrt(in))."""
    kw, kb = jax.random.split(key)
    bound_w = (6.0 / (in_features + out_features)) ** 0.5
    # PyTorch weight is [out, in]; we store its transpose [in, out].
    weight_t = jax.random.uniform(
        kw, (in_features, out_features), dtype, minval=-bound_w, maxval=bound_w
    )
    bound_b = 1.0 / (in_features ** 0.5)
    bias = jax.random.uniform(
        kb, (out_features,), dtype, minval=-bound_b, maxval=bound_b
    )
    return weight_t, bias


if __name__ == "__main__":
    key = jax.random.PRNGKey(0)
    k_x, k_p, k_x2, k_p2, k_x3, k_p3 = jax.random.split(key, 6)

    # Small shape implied by the module's typical use: [batch, seq, hidden].
    batch, seq, in_features, out_features = 2, 8, 32, 64
    x = jax.random.normal(k_x, (batch, seq, in_features), dtype=jnp.float32)
    weight_t, bias = init_linear_params(k_p, in_features, out_features)

    out = pallas_linear(x, weight_t, bias)
    out = jax.block_until_ready(out)

    ref = x @ weight_t + bias
    assert out.shape == (batch, seq, out_features)
    assert jnp.allclose(out, ref, atol=1e-5, rtol=1e-5)

    # Multi-tile grid with K/N not multiples of the target tiles
    # (exercises the "pad only to 128, pick a dividing tile" path).
    M2, K2, N2 = 512, 640, 384
    x2 = jax.random.normal(k_x2, (M2, K2), dtype=jnp.float32)
    weight_t2, bias2 = init_linear_params(k_p2, K2, N2)
    out2 = jax.block_until_ready(pallas_linear(x2, weight_t2, bias2))
    ref2 = x2 @ weight_t2 + bias2
    assert out2.shape == (M2, N2)
    assert jnp.allclose(out2, ref2, atol=1e-4, rtol=1e-4)

    # Aligned shapes: no padding / slicing ops are emitted, multi-step K reduction.
    M3, K3, N3 = 1024, 2048, 1024
    x3 = jax.random.normal(k_x3, (M3, K3), dtype=jnp.float32)
    weight_t3, bias3 = init_linear_params(k_p3, K3, N3)
    out3 = jax.block_until_ready(pallas_linear(x3, weight_t3, bias3))
    ref3 = x3 @ weight_t3 + bias3
    assert out3.shape == (M3, N3)
    assert jnp.allclose(out3, ref3, atol=1e-3, rtol=1e-3)

    print("KERNEL_OK")
</pallas_src>

<mosaic_0001>
module attributes {stable_mosaic.version = 11 : i64} {
  func.func @_linear_kernel(%arg0: i32, %arg1: i32, %arg2: i32, %arg3: memref<8x128xf32, #tpu.memory_space<vmem>>, %arg4: memref<128x128xf32, #tpu.memory_space<vmem>>, %arg5: memref<1x128xf32, #tpu.memory_space<vmem>>, %arg6: memref<8x128xf32, #tpu.memory_space<vmem>>, %arg7: memref<8x128xf32, #tpu.memory_space<vmem>>) attributes {dimension_semantics = [#tpu.dimension_semantics<parallel>, #tpu.dimension_semantics<parallel>, #tpu.dimension_semantics<arbitrary>], iteration_bounds = array<i64: 2, 1, 1>, scalar_prefetch = 0 : i64, scratch_operands = 1 : i64, tpu.core_type = #tpu.core_type<tc>, window_params = [{transform_indices = @transform_0, window_bounds = array<i64: 8, 128>}, {transform_indices = @transform_1, window_bounds = array<i64: 128, 128>}, {transform_indices = @transform_2, window_bounds = array<i64: 1, 128>}, {transform_indices = @transform_3, window_bounds = array<i64: 8, 128>}]} {
    %c0_i32 = arith.constant 0 : i32
    %0 = arith.cmpi eq, %arg2, %c0_i32 : i32
    %1 = arith.extui %0 : i1 to i32
    %c0_i32_0 = arith.constant 0 : i32
    %2 = arith.cmpi ne, %1, %c0_i32_0 : i32
    scf.if %2 {
      %cst_10 = arith.constant 0.000000e+00 : f32
      %12 = vector.broadcast %cst_10 : f32 to vector<8x128xf32>
      %c0_11 = arith.constant 0 : index
      %c0_12 = arith.constant 0 : index
      %13 = vector.load %arg7[%c0_11, %c0_12] : memref<8x128xf32, #tpu.memory_space<vmem>>, vector<8x128xf32>
      tpu.vector_store %arg7[%c0_11, %c0_12], %12 {strides = array<i32>} : memref<8x128xf32, #tpu.memory_space<vmem>>, vector<8x128xf32>,
    } else {
    }
    %c0 = arith.constant 0 : index
    %c0_1 = arith.constant 0 : index
    %3 = vector.load %arg7[%c0, %c0_1] : memref<8x128xf32, #tpu.memory_space<vmem>>, vector<8x128xf32>
    %c0_2 = arith.constant 0 : index
    %c0_3 = arith.constant 0 : index
    %4 = vector.load %arg3[%c0_2, %c0_3] : memref<8x128xf32, #tpu.memory_space<vmem>>, vector<8x128xf32>
    %c0_4 = arith.constant 0 : index
    %c0_5 = arith.constant 0 : index
    %5 = vector.load %arg4[%c0_4, %c0_5] : memref<128x128xf32, #tpu.memory_space<vmem>>, vector<128x128xf32>
    %cst = arith.constant dense<0.000000e+00> : vector<8x128xf32>
    %6 = tpu.matmul %4, %5, %cst {dimension_numbers = #tpu.dot_dimension_numbers<[1], [0], [0], [1], [0, 0, 1, 1], [], []>} : vector<8x128xf32>, vector<128x128xf32>, vector<8x128xf32> -> vector<8x128xf32>
    %7 = arith.addf %3, %6 : vector<8x128xf32>
    %c0_6 = arith.constant 0 : index
    %c0_7 = arith.constant 0 : index
    %8 = vector.load %arg7[%c0_6, %c0_7] : memref<8x128xf32, #tpu.memory_space<vmem>>, vector<8x128xf32>
    tpu.vector_store %arg7[%c0_6, %c0_7], %7 {strides = array<i32>} : memref<8x128xf32, #tpu.memory_space<vmem>>, vector<8x128xf32>,
    %c0_i32_8 = arith.constant 0 : i32
    %9 = arith.cmpi eq, %arg2, %c0_i32_8 : i32
    %10 = arith.extui %9 : i1 to i32
    %c0_i32_9 = arith.constant 0 : i32
    %11 = arith.cmpi ne, %10, %c0_i32_9 : i32
    scf.if %11 {
      %c0_10 = arith.constant 0 : index
      %c0_11 = arith.constant 0 : index
      %12 = vector.load %arg7[%c0_10, %c0_11] : memref<8x128xf32, #tpu.memory_space<vmem>>, vector<8x128xf32>
      %c0_12 = arith.constant 0 : index
      %c0_13 = arith.constant 0 : index
      %13 = vector.load %arg5[%c0_12, %c0_13] : memref<1x128xf32, #tpu.memory_space<vmem>>, vector<1x128xf32>
      %14 = vector.broadcast %13 : vector<1x128xf32> to vector<8x128xf32>
      %15 = arith.addf %12, %14 : vector<8x128xf32>
      %c0_14 = arith.constant 0 : index
      %c0_15 = arith.constant 0 : index
      %16 = vector.load %arg6[%c0_14, %c0_15] : memref<8x128xf32, #tpu.memory_space<vmem>>, vector<8x128xf32>
      tpu.vector_store %arg6[%c0_14, %c0_15], %15 {strides = array<i32>} : memref<8x128xf32, #tpu.memory_space<vmem>>, vector<8x128xf32>,
    } else {
    }
    return
  }
  func.func @transform_0(%arg0: i32, %arg1: i32, %arg2: i32) -> (i32, i32) {
    %c0_i32 = arith.constant 0 : i32
    return %arg0, %arg2 : i32, i32
  }
  func.func @transform_1(%arg0: i32, %arg1: i32, %arg2: i32) -> (i32, i32) {
    %c0_i32 = arith.constant 0 : i32
    return %arg2, %arg1 : i32, i32
  }
  func.func @transform_2(%arg0: i32, %arg1: i32, %arg2: i32) -> (i32, i32) {
    %c0_i32 = arith.constant 0 : i32
    %c0_i32_0 = arith.constant 0 : i32
    return %c0_i32, %arg1 : i32, i32
  }
  func.func @transform_3(%arg0: i32, %arg1: i32, %arg2: i32) -> (i32, i32) {
    %c0_i32 = arith.constant 0 : i32
    return %arg0, %arg1 : i32, i32
  }
}

</mosaic_0001>

<bundles_post_ra>
// kernel: tpu_custom_call.1
= control target key start
LH: loop header
LB: loop body
LE: loop exit
PB: predicated region body
PF: predicated region fallthrough
CT: control target
= control target key end

     0   :  { %8 = vsyncpa [#allocation4], 0  ;;  %s852_s0 = inlined_call_operand.hbm [shape: f32[16,128], index: 0, kind: input, shape index: {}]   ;;  %s853_s1 = inlined_call_operand.hbm [shape: f32[128,128], index: 1, kind: input, shape index: {}]   ;;  %s854_s2 = inlined_call_operand.vmem [shape: f32[1,128], index: 2, kind: input, shape index: {}]   ;;  %s855_s3 = inlined_call_operand.hbm [shape: f32[16,128], index: 3, kind: output, shape index: {}]  }
   0x1   :  { %10 = vsyncpa [#allocation4 + $0x1], 0 }
   0x2   :  { %11 = vsyncpa [#allocation7], 0 }
   0x3   :  { %12 = vsyncpa [#allocation5], 0 }
   0x4   :  { %14 = vsyncpa [#allocation5 + $0x1], 0  ;;  %s699_s12 = smov 0   ;;  %s701_s13 = smov 0  }
   0x5   :  { %s703_s14 = smov 0   ;;  %s705_s15 = smov 0  }
   0x6   :  { %s707_s16 = smov 0   ;;  %s709_s17 = smov 0  }
   0x7 LB: > { %s436_s18 = sadd.s32 4294967295, %s674_s17   ;;  %p438_p0 = scmp.ge.s32.totalorder %s674_s17, 1  ;;  %s674_s17 = sphi %s709_s17, %s20_s17   ;;  %s670_s16 = sphi %s707_s16, %s866_s16   ;;  %s666_s15 = sphi %s705_s15, %s865_s15   ;;  %s662_s14 = sphi %s703_s14, %s864_s14   ;;  %s658_s13 = sphi %s701_s13, %s863_s13   ;;  %s654_s12 = sphi %s699_s12, %s862_s12  }
   0x8   : > { %p731_p1 = scmp.eq.s32.totalorder %s436_s18, 0  ;;  %p154_p2 = scmp.lt.s32.totalorder %s674_s17, 3 }
   0x9   : > { %s169_s22 = sshll.u32 %s853_s1, 4  ;;  %s676_s24 = smov [#allocation6]   ;;  %s170_s22 = int_to_ptr.hbm [resolvable:$true] %s169_s22 }
   0xa   : > { %p739_p3 = pnand %p438_p0, %p154_p2  ;;  %s171_s25 = sshll.u32 %s676_s24, 4  ;;  %s172_s25 = int_to_ptr.vmem [resolvable:$true] %s171_s25 }
   0xb   : > { %p441_p6 = scmp.ge.s32.totalorder %s674_s17, 2  ;;  %s677_s26 = smov 128  }
   0xc   : > { %p460_p4 = pneg %p739_p3  ;;  %s678_s27 = smov 8  }
   0xd   : > { %s437_s28 = sadd.s32 4294967294, %s674_s17   ;;  %s39_s29 = sadd.s32 1, %s670_s16 }
   0xe   : > { %p461_p5 = pnand %p460_p4, %p731_p1  ;;  %s48_s30 = sadd.s32 1, %s662_s14 }
   0xf   : > { %p41_p7 = scmp.ge.s32.totalorder %s39_s29, 2  ;;  %p55_p8 = scmp.ne.s32.totalorder %s662_s14, %s658_s13 }
  0x10   : > { %463 = dma.hbm_to_vmem [thread:$0]  (!%p461_p5), %s170_s22, 2048, %s172_s25, [#allocation7], %s677_s26, %s677_s26, %s678_s27  }
  0x11   : > { %p56_p9 = scmp.eq.s32.totalorder %s674_s17, 0  ;;  %p61_p10 = scmp.ne.s32.totalorder %s658_s13, %s654_s12 }
  0x12   : > { %s868_s29 = smov (%p41_p7, %s39_s29), 0  ;;  %p141_p13 = scmp.eq.s32.totalorder %s436_s18, 1 }
  0x13   : > { %p758_p11 = por %p56_p9, %p55_p8  ;;  %p764_p12 = por %p731_p1, %p61_p10 }
  0x14   : > { %s43_s6 = ssub.s32 %s670_s16, %s868_s29  ;;  %p147_p2 = scmp.eq.s32.totalorder %s437_s28, 1 }
  0x15   : > { %p46_p0 = scmp.eq.s32.totalorder %s43_s6, 0  ;;  %p770_p4 = por %p141_p13, %p55_p8 }
  0x16   : > { %p473_p5 = scmp.lt.s32.totalorder %s674_s17, 2  ;;  %p778_p7 = por %p147_p2, %p61_p10 }
  0x17   : > { %s776_s8 = scalar_select %p46_p0, %s662_s14, %s48_s30  }
  0x18   : > { %s191_s10 = sand.u32 1, %s662_s14   ;;  %s443_s20 = sshll.u32 %s670_s16, 3 }
  0x19   : > { %s442_s11 = sshll.u32 %s191_s10, 3  ;;  %s200_s18 = scalar_lea.hbm %s852_s0, %s443_s20 }
  0x1a   : > { %s195_s24 = scalar_lea.vmem [#allocation3], %s442_s11  ;;  %s202_s26 = sshll.u32 %s200_s18, 4  ;;  %s203_s26 = int_to_ptr.hbm [resolvable:$true] %s202_s26 }
  0x1b   : > { %s204_s25 = sshll.u32 %s195_s24, 4  ;;  %p465_p8 = pnand %p473_p5, %p758_p11  ;;  %s205_s25 = int_to_ptr.vmem [resolvable:$true] %s204_s25 }
  0x1c   : > { %s192_s27 = scalar_lea.sflag [#allocation4], %s191_s10  ;;  %213 = sbr.rel (%p739_p3) target bundleno = 199 (0xc7), region = 32 }
  0x1d   : > { %467 = dma.hbm_to_vmem [thread:$0]  (!%p465_p8), %s203_s26, 128, %s205_s25, %s192_s27  }
  0x1e   : > { %s792_s28 = sand.u32 (!%p739_p3), 1, %s658_s13  }
  0x1f   : > { %s445_s30 = sshll.u32 (!%p739_p3), %s792_s28, 3  ;;  %s216_s6 = scalar_lea.sflag (!%p739_p3), [#allocation4], %s792_s28 }
  0x20   : > { %s798_s11 = scalar_lea.vmem (!%p739_p3), [#allocation3], %s445_s30 }
  0x21   : > { %641 = dma.done.wait (%p764_p12), %s216_s6, 128  }
  0x22   : > { %643 = vsyncadd (%p764_p12), %s216_s6, 4294967168 }
  0x23   : > { %645 = dma.done.wait (%p731_p1), [#allocation7], 2048  }
  0x24   : > { %647 = vsyncadd (%p731_p1), [#allocation7], 4294965248  ;;  %v277_v0 = vld [vmem:[#allocation6 + $0x78] sm:$0xff]  ;;  %v276_v1 = vld [vmem:[#allocation6 + $0x70] sm:$0xff]  ;;  %s449_s19 = sshll.u32 %s666_s15, 3  ;;  %s250_s21 = scalar_lea.vmem [#allocation8], %s445_s30 }
  0x25   : > { %278 = vmatpush.msra.mxu0 %v277_v0  ;;  %v275_v2 = vld [vmem:[#allocation6 + $0x68] sm:$0xff]  ;;  %v274_v3 = vld [vmem:[#allocation6 + $0x60] sm:$0xff]  ;;  %v273_v4 = vld [vmem:[#allocation6 + $0x58] sm:$0xff]  ;;  %s322_s5 = scalar_lea.hbm %s855_s3, %s449_s19  ;;  %s324_s22 = sshll.u32 %s250_s21, 4  ;;  %s325_s22 = int_to_ptr.vmem [resolvable:$true] %s324_s22 }
  0x26   : > { %v272_v5 = vld [vmem:[#allocation6 + $0x50] sm:$0xff]  ;;  %v271_v6 = vld [vmem:[#allocation6 + $0x48] sm:$0xff]  ;;  %v270_v7 = vld [vmem:[#allocation6 + $0x40] sm:$0xff]  ;;  %s326_s18 = sshll.u32 %s322_s5, 4  ;;  %s311_s24 = scalar_lea.sflag [#allocation5], %s792_s28  ;;  %s327_s18 = int_to_ptr.hbm [resolvable:$true] %s326_s18 }
  0x27   : > { %279 = vmatpush.msra.mxu0 %v276_v1  ;;  %v269_v8 = vld [vmem:[#allocation6 + $0x38] sm:$0xff]  ;;  %v268_v9 = vld [vmem:[#allocation6 + $0x30] sm:$0xff]  ;;  %v267_v10 = vld [vmem:[#allocation6 + $0x28] sm:$0xff]  ;;  %s602_s15 = sshra.s32 %s327_s18, 4  ;;  %s608_s6 = scalar_lea.hbm %s855_s3, 16  ;;  %s603_s15 = int_to_ptr.hbm [resolvable:$true] %s602_s15 }
  0x28   : > { %v266_v11 = vld [vmem:[#allocation6 + $0x20] sm:$0xff]  ;;  %v265_v12 = vld [vmem:[#allocation6 + $0x18] sm:$0xff]  ;;  %v264_v13 = vld [vmem:[#allocation6 + $0x10] sm:$0xff]  ;;  %s604_s25 = scalar_lea.hbm %s603_s15, 8  ;;  %p609_p10 = scmp.lt.s32.totalorder %s603_s15, %s855_s3 }
  0x29   : > { %280 = vmatpush.msra.mxu0 %v275_v2  ;;  %v263_v14 = vld [vmem:[#allocation6 + $0x8] sm:$0xff]  ;;  %v262_v15 = vld [vmem:[#allocation6] sm:$0xff]  ;;  %v261_v16 = vld [vmem:[%s798_s11] sm:$0xff]  ;;  %p605_p1 = scmp.ne.s32.totalorder %s603_s15, %s604_s25  ;;  %p610_p11 = scmp.lt.s32.totalorder %s608_s6, %s604_s25 }
  0x2a   : > { %v527_v17 = vld [vmem:[%s854_s2] ss:$0 sm:$0xff] }
  0x2b   : > { %281 = vmatpush.msra.mxu0 %v274_v3  ;;  %p606_p3 = pnand %p605_p1, %p770_p4  ;;  %p611_p12 = por %p610_p11, %p609_p10 }
  0x2d   : > { %282 = vmatpush.msra.mxu0 %v273_v4  ;;  %p607_p9 = pneg %p606_p3 }
  0x2f   : > { %283 = vmatpush.msra.mxu0 %v272_v5  ;;  %p612_p13 = pnand %p611_p12, %p607_p9 }
  0x31   : > { %284 = vmatpush.msra.mxu0 %v271_v6 }
  0x33   : > { %285 = vmatpush.msra.mxu0 %v270_v7 }
  0x35   : > { %286 = vmatpush.msra.mxu0 %v269_v8 }
  0x37   : > { %287 = vmatpush.msra.mxu0 %v268_v9 }
  0x39   : > { %288 = vmatpush.msra.mxu0 %v267_v10 }
  0x3b   : > { %289 = vmatpush.msra.mxu0 %v266_v11 }
  0x3d   : > { %290 = vmatpush.msra.mxu0 %v265_v12 }
  0x3f   : > { %291 = vmatpush.msra.mxu0 %v264_v13 }
  0x41   : > { %292 = vmatpush.msra.mxu0 %v263_v14 }
  0x43   : > { %293 = vmatpush.msra.mxu0 %v262_v15 }
  0x44   : > { %294 = vmatmul.f32.vlgmr.msra.gmra.mxu0 %v261_v16 }
  0xc1   : > { %v295_v18 = vpop.f32.mrf.mxu0 }
  0xc2   : > { %v308_v19 = vadd.f32 %v527_v17, %v295_v18 }
  0xc4   : > { %309 = vst [vmem:[%s250_s21] sm:$0xff] %v308_v19 }
  0xc5   : > { %615 = shalt.err (!%p612_p13)
}
  0xc6   : > { %458 = dma.vmem_to_hbm [thread:$0]  (%p770_p4), %s325_s22, 128, %s327_s18, %s311_s24  }
  0xc7 PF: > { %s338_s28 = sand.u32 1, %s654_s12   ;;  %p469_p0 = pnand %p441_p6, %p778_p7 }
  0xc8   : > { %s339_s19 = scalar_lea.sflag [#allocation5], %s338_s28 }
  0xc9   : > { %p470_p2 = pneg %p469_p0 }
  0xcb   : > { %649 = dma.done.wait (%p470_p2), %s339_s19, 128  }
  0xcc   : > { %651 = vsyncadd (%p470_p2), %s339_s19, 4294967168  ;;  %s20_s17 = sadd.s32 1, %s674_s17   ;;  %s862_s12 = smov %s658_s13 }
  0xcd   : > { %p17_p5 = scmp.ge.s32.totalorder %s20_s17, 4   ;;  %s863_s13 = smov %s662_s14 }
  0xce   : > { %s864_s14 = smov %s776_s8  ;;  %s865_s15 = smov %s670_s16 }
  0xcf   : > { %s866_s16 = smov %s868_s29  ;;  %19 = sbr.rel (!%p17_p5) target bundleno = 7 (0x7), region = 93 }
  0xd4   :  { %345 = vsyncpa [#allocation4], 1 }
  0xd5   :  { %347 = vsyncpa [#allocation4 + $0x1], 1 }
  0xd6   :  { %348 = vsyncpa [#allocation7], 1 }
  0xd7   :  { %349 = vsyncpa [#allocation5], 1 }
  0xd8   :  { %351 = vsyncpa [#allocation5 + $0x1], 1 }

</bundles_post_ra>
